<compile_context>
chip_gen: v5e
topology: v5e:2x2
jax: 0.10.0
libtpu: 0.0.40
codegen_flags: <defaults>
</compile_context>

<pallas_src>
import functools

import jax
import jax.numpy as jnp
from jax import lax
from jax.experimental import pallas as pl
from jax.experimental.pallas import tpu as pltpu

LN_EPS = 1e-5          # torch.nn.LayerNorm default
LEAKY_SLOPE = 0.01     # torch.nn.LeakyReLU default negative_slope

_LANE = 128            # lane width
_SUBLANE = 16          # safe sublane multiple for both f32 (8) and bf16 (16)
_MAX_TILE_M = 1024


def _round_up(a, b):
    return (a + b - 1) // b * b


def _round_down(a, b):
    return a // b * b


# --------------------------------------------------------------------------- #
# Device VMEM query (generation-aware limit)                                   #
# --------------------------------------------------------------------------- #
_VMEM_CAP = None


def _device_vmem_cap():
    """Per-TensorCore VMEM capacity in bytes (conservative 64 MiB fallback)."""
    global _VMEM_CAP
    if _VMEM_CAP is None:
        cap = 0
        try:
            cap = int(getattr(pltpu.get_tpu_info(), "vmem_capacity_bytes", 0))
        except Exception:
            cap = 0
        _VMEM_CAP = cap if cap > 0 else 64 * 1024 * 1024   # v7x-sized fallback
    return _VMEM_CAP


# --------------------------------------------------------------------------- #
# Kernel bodies                                                                #
# --------------------------------------------------------------------------- #
def _ln_leaky_epilogue(y, gamma, beta, valid_cols):
    """LayerNorm (over the last dim, first `valid_cols` lanes valid) + LeakyReLU.

    Padded lanes of `y` are exactly zero (zero weight columns + zero bias), so the
    mean needs no pre-mask; only the centered values are masked before the variance.
    """
    padded_cols = y.shape[-1]
    inv_n = 1.0 / valid_cols                      # true C_out, not padded
    mean = jnp.sum(y, axis=-1, keepdims=True) * inv_n
    centered = y - mean
    if padded_cols != valid_cols:
        lane = lax.broadcasted_iota(jnp.int32, (1, padded_cols), 1)
        centered = jnp.where(lane < valid_cols, centered, 0.0)
    var = jnp.sum(centered * centered, axis=-1, keepdims=True) * inv_n
    y_hat = centered * lax.rsqrt(var + LN_EPS)
    y_hat = y_hat * gamma + beta                  # padded lanes: gamma=beta=0
    return jnp.where(y_hat >= 0, y_hat, LEAKY_SLOPE * y_hat)


def _linear_block_kernel_resident(x_ref, w_ref, p_ref, o_ref, *, valid_cols):
    """Weight fully resident in VMEM: grid = (M tiles,), single fused pass."""
    y = jnp.dot(x_ref[...], w_ref[...], preferred_element_type=jnp.float32)
    y = y + p_ref[0:1, :]                         # bias
    out = _ln_leaky_epilogue(y, p_ref[1:2, :], p_ref[2:3, :], valid_cols)
    o_ref[...] = out.astype(o_ref.dtype)


def _linear_block_kernel_ktiled(x_ref, w_ref, p_ref, o_ref, *scratch, valid_cols):
    """K-tiled path: grid = (M tiles, K tiles), f32 accumulator.

    The accumulator is either a VMEM scratch buffer, or (when the output is f32)
    the resident output block itself — its block index is constant across k.
    """
    acc_ref = scratch[0] if scratch else o_ref
    k = pl.program_id(1)

    @pl.when(k == 0)
    def _init():
        # Initialize with the broadcast bias: removes the "+ bias" epilogue pass.
        acc_ref[...] = jnp.broadcast_to(p_ref[0:1, :], acc_ref.shape)

    acc_ref[...] += jnp.dot(x_ref[...], w_ref[...],
                            preferred_element_type=jnp.float32)

    @pl.when(k == pl.num_programs(1) - 1)
    def _finalize():
        y = acc_ref[...]
        out = _ln_leaky_epilogue(y, p_ref[1:2, :], p_ref[2:3, :], valid_cols)
        o_ref[...] = out.astype(o_ref.dtype)


# --------------------------------------------------------------------------- #
# Trace-time tile planning against the per-generation VMEM budget              #
# --------------------------------------------------------------------------- #
def _plan_tiles(m, c_in, c_out, x_isz, w_isz, o_isz, out_is_f32,
                plan_budget, single_buffer, tile_m_hint, tile_k_hint):
    c_out_p = _round_up(c_out, _LANE)
    p_bufs = 1 if single_buffer else 2
    params_bytes = 8 * c_out_p * 4 * p_bufs        # (3, c_out_p) f32, 8-sublane padded
    m_sub = _round_up(m, _SUBLANE)

    # ---- weight residency: keep W fully in VMEM (loaded once) if it fits ----
    w_bufs_res = 1 if single_buffer else 2
    w_res_bytes = c_in * c_out_p * w_isz * w_bufs_res
    per_row_res = 2 * c_in * x_isz + 2 * c_out_p * o_isz + 2 * c_out_p * 4
    force_ktile = (tile_k_hint is not None and
                   _round_up(tile_k_hint, _LANE) < c_in)
    resident = (not force_ktile and
                w_res_bytes + params_bytes + _SUBLANE * per_row_res <= plan_budget)

    if resident:
        tile_k_eff, c_in_p, num_k = c_in, c_in, 1
        acc_scratch = False
        tm_cap = (plan_budget - w_res_bytes - params_bytes) // per_row_res
    else:
        acc_scratch = not out_is_f32               # f32 output doubles as accumulator

        def fixed_bytes(tk):
            return 2 * tk * c_out_p * w_isz + params_bytes

        def per_row(tk):
            return (2 * tk * x_isz + 2 * c_out_p * o_isz
                    + (c_out_p * 4 if acc_scratch else 0) + 2 * c_out_p * 4)

        if tile_k_hint is not None:
            tile_k_eff = min(_round_up(tile_k_hint, _LANE), _round_up(c_in, _LANE))
        else:
            tile_k_eff = None
        min_tk = tile_k_eff if tile_k_eff is not None else _LANE
        tm_cap = (plan_budget - fixed_bytes(min_tk)) // per_row(min_tk)

    # ---- tile_m: largest sublane multiple that fits, capped to the problem ---
    tile_m = max(_SUBLANE,
                 min(_MAX_TILE_M, m_sub,
                     _round_down(max(tm_cap, _SUBLANE), _SUBLANE)))
    if tile_m_hint is not None:
        tile_m = max(_SUBLANE, min(tile_m, _round_up(tile_m_hint, _SUBLANE)))
    # TODO(synk): for extremely wide C_out (full-width f32 accumulator won't fit
    # VMEM even at tile_m=16, e.g. >=16K on v7x) add a two-pass N-tiled matmul +
    # separate LayerNorm variant instead of squeezing the minimum tile.

    # ---- tile_k (K-tiled path only): biggest K slice that still fits ---------
    if not resident:
        if tile_k_eff is None:
            cands = [t for t in (2048, 1024, 512, 256, 128)
                     if t <= _round_up(c_in, _LANE)]
            if not cands:
                cands = [_round_up(c_in, _LANE)]
            tile_k_eff = cands[-1]
            for t in cands:                        # descending
                if fixed_bytes(t) + tile_m * per_row(t) <= plan_budget:
                    tile_k_eff = t
                    break
        c_in_p = _round_up(c_in, tile_k_eff)
        num_k = c_in_p // tile_k_eff

    # ---- megacore: ensure the 'parallel' M axis has >= 2 blocks when possible -
    m_pad = _round_up(m, tile_m)
    if m_pad // tile_m == 1 and m_sub >= 2 * _SUBLANE:
        tile_m = _round_up((m + 1) // 2, _SUBLANE)
        m_pad = _round_up(m, tile_m)
    num_m = m_pad // tile_m

    return tile_m, m_pad, num_m, tile_k_eff, c_in_p, num_k, c_out_p, acc_scratch


# --------------------------------------------------------------------------- #
# pallas_call wrapper                                                          #
# --------------------------------------------------------------------------- #
@functools.partial(
    jax.jit,
    static_argnames=("tile_m", "tile_k", "single_buffer_params", "vmem_cap"))
def _linear_block_impl(x, weight, bias, gamma, beta, *, tile_m, tile_k,
                       single_buffer_params, vmem_cap):
    orig_shape = x.shape
    c_in = orig_shape[-1]
    c_out = weight.shape[1]
    x2d = x.reshape(-1, c_in)
    m = x2d.shape[0]

    # Same dtype on both MXU operands (mixed bf16/f32 would hit the slow path).
    if weight.dtype != x.dtype:
        weight = weight.astype(x.dtype)

    out_dtype = x.dtype
    out_is_f32 = (out_dtype == jnp.float32)
    x_isz = x2d.dtype.itemsize
    w_isz = weight.dtype.itemsize
    o_isz = jnp.dtype(out_dtype).itemsize

    # ---- generation-aware VMEM budget ----------------------------------------
    limit_ceiling = min(int(vmem_cap * 0.85), 100 * 1024 * 1024)
    plan_budget = int(limit_ceiling * 0.75)

    (tile_m_eff, m_pad, num_m, tile_k_eff, c_in_p, num_k,
     c_out_p, acc_scratch) = _plan_tiles(
        m, c_in, c_out, x_isz, w_isz, o_isz, out_is_f32,
        plan_budget, single_buffer_params, tile_m, tile_k)

    # ---- wrapper-side padding (zeros are exact no-ops for the math) ----------
    if m_pad != m or c_in_p != c_in:
        x2d = jnp.pad(x2d, ((0, m_pad - m), (0, c_in_p - c_in)))
    if c_in_p != c_in or c_out_p != c_out:
        weight = jnp.pad(weight, ((0, c_in_p - c_in), (0, c_out_p - c_out)))
    pad_c = c_out_p - c_out
    params = jnp.stack([
        jnp.pad(bias.astype(jnp.float32), (0, pad_c)),
        jnp.pad(gamma.astype(jnp.float32), (0, pad_c)),
        jnp.pad(beta.astype(jnp.float32), (0, pad_c)),
    ], axis=0)                                               # (3, c_out_p) f32

    # ---- BlockSpecs / grid ----------------------------------------------------
    const_kwargs = (
        {"pipeline_mode": pl.Buffered(1)} if single_buffer_params else {})

    if num_k == 1:
        # Resident weight: one K block, W/params loaded once for the whole grid.
        kernel = functools.partial(_linear_block_kernel_resident, valid_cols=c_out)
        grid = (num_m,)
        in_specs = [
            pl.BlockSpec((tile_m_eff, c_in_p), lambda i: (i, 0)),              # x
            pl.BlockSpec((c_in_p, c_out_p), lambda i: (0, 0), **const_kwargs),  # W
            pl.BlockSpec((3, c_out_p), lambda i: (0, 0), **const_kwargs),       # b/g/beta
        ]
        out_spec = pl.BlockSpec((tile_m_eff, c_out_p), lambda i: (i, 0))
        scratch_shapes = []
        dim_sem = ("parallel",)
        w_bufs = 1 if single_buffer_params else 2
        vmem_est = (w_bufs * c_in_p * c_out_p * w_isz
                    + 2 * tile_m_eff * c_in_p * x_isz
                    + 2 * tile_m_eff * c_out_p * o_isz
                    + 2 * tile_m_eff * c_out_p * 4          # f32 temporaries
                    + 8 * c_out_p * 4 * (1 if single_buffer_params else 2))
    else:
        kernel = functools.partial(_linear_block_kernel_ktiled, valid_cols=c_out)
        grid = (num_m, num_k)
        in_specs = [
            pl.BlockSpec((tile_m_eff, tile_k_eff), lambda i, k: (i, k)),         # x
            pl.BlockSpec((tile_k_eff, c_out_p), lambda i, k: (k, 0)),            # W
            pl.BlockSpec((3, c_out_p), lambda i, k: (0, 0), **const_kwargs),     # b/g/beta
        ]
        out_spec = pl.BlockSpec((tile_m_eff, c_out_p), lambda i, k: (i, 0))
        scratch_shapes = ([pltpu.VMEM((tile_m_eff, c_out_p), jnp.float32)]
                          if acc_scratch else [])
        dim_sem = ("parallel", "arbitrary")
        vmem_est = (2 * tile_k_eff * c_out_p * w_isz
                    + 2 * tile_m_eff * tile_k_eff * x_isz
                    + 2 * tile_m_eff * c_out_p * o_isz
                    + (tile_m_eff * c_out_p * 4 if acc_scratch else 0)
                    + 2 * tile_m_eff * c_out_p * 4
                    + 8 * c_out_p * 4 * (1 if single_buffer_params else 2))

    vmem_limit = int(min(limit_ceiling,
                         max(32 * 1024 * 1024, int(vmem_est * 1.5))))

    out2d = pl.pallas_call(
        kernel,
        out_shape=jax.ShapeDtypeStruct((m_pad, c_out_p), out_dtype),
        grid_spec=pltpu.PrefetchScalarGridSpec(
            num_scalar_prefetch=0,
            grid=grid,
            in_specs=in_specs,
            out_specs=out_spec,
            scratch_shapes=scratch_shapes,
        ),
        compiler_params=pltpu.CompilerParams(
            dimension_semantics=dim_sem,
            vmem_limit_bytes=vmem_limit,
        ),
    )(x2d, weight, params)

    # Crop only when padding was applied (padded cases pay one extra HBM pass).
    if m_pad != m or c_out_p != c_out:
        out2d = out2d[:m, :c_out]
    return out2d.reshape(orig_shape[:-1] + (c_out,))


_SINGLE_BUFFER_SUPPORTED = None   # resolved on first call


def linear_block(x, weight, bias, gamma, beta, tile_m=None, tile_k=None):
    """Fused Linear + LayerNorm + LeakyReLU.

    x:      (..., C_in)
    weight: (C_in, C_out)   (transposed vs. torch's nn.Linear.weight)
    bias, gamma, beta: (C_out,)
    tile_m / tile_k: optional caps on the auto-derived tiles (None = auto).
    """
    global _SINGLE_BUFFER_SUPPORTED
    vmem_cap = _device_vmem_cap()
    if _SINGLE_BUFFER_SUPPORTED is not False:
        try:
            out = _linear_block_impl(x, weight, bias, gamma, beta,
                                     tile_m=tile_m, tile_k=tile_k,
                                     single_buffer_params=True,
                                     vmem_cap=vmem_cap)
            _SINGLE_BUFFER_SUPPORTED = True
            return out
        except Exception:
            # pl.Buffered(1) not accepted by this JAX build — fall back to the
            # default double-buffered specs (still correct, slightly more VMEM).
            _SINGLE_BUFFER_SUPPORTED = False
    return _linear_block_impl(x, weight, bias, gamma, beta,
                              tile_m=tile_m, tile_k=tile_k,
                              single_buffer_params=False,
                              vmem_cap=vmem_cap)


def _reference(x, weight, bias, gamma, beta):
    y = jnp.einsum("...i,io->...o", x.astype(jnp.float32),
                   weight.astype(jnp.float32)) + bias
    mean = jnp.mean(y, axis=-1, keepdims=True)
    var = jnp.mean((y - mean) ** 2, axis=-1, keepdims=True)
    y = (y - mean) * lax.rsqrt(var + LN_EPS) * gamma + beta
    return jnp.where(y >= 0, y, LEAKY_SLOPE * y)


if __name__ == "__main__":
    key = jax.random.PRNGKey(0)

    def make_params(k, c_in, c_out):
        kw, kb, kg, kbe = jax.random.split(k, 4)
        bound = 1.0 / (c_in ** 0.5)
        w = jax.random.uniform(kw, (c_in, c_out), minval=-bound, maxval=bound,
                               dtype=jnp.float32)
        b = jax.random.uniform(kb, (c_out,), minval=-bound, maxval=bound,
                               dtype=jnp.float32)
        g = jnp.ones((c_out,), jnp.float32) + 0.1 * jax.random.normal(kg, (c_out,))
        be = 0.1 * jax.random.normal(kbe, (c_out,))
        return w, b, g, be

    k1, k2, k3, kx1, kx2, kx3 = jax.random.split(key, 6)

    # Case 1: the module's nominal small shapes (batch=2, seq=8, 32 -> 32),
    # auto-planned -> resident-weight single-pass kernel.
    x = jax.random.normal(kx1, (2, 8, 32), dtype=jnp.float32)
    w, b, g, be = make_params(k1, 32, 32)
    out = jax.block_until_ready(linear_block(x, w, b, g, be))
    ref = _reference(x, w, b, g, be)
    assert out.shape == (2, 8, 32)
    assert jnp.allclose(out, ref, atol=1e-4, rtol=1e-4), "case 1 mismatch"

    # Case 2: non-aligned f32 shapes; forces K tiling (f32 output used directly as
    # the accumulator), M padding, and the masked LayerNorm (C_out % 128 != 0).
    x2 = jax.random.normal(kx2, (3, 37, 160), dtype=jnp.float32)
    w2, bb2, g2, be2 = make_params(k2, 160, 96)
    out2 = jax.block_until_ready(
        linear_block(x2, w2, bb2, g2, be2, tile_m=32, tile_k=128))
    ref2 = _reference(x2, w2, bb2, g2, be2)
    assert out2.shape == (3, 37, 96)
    assert jnp.allclose(out2, ref2, atol=1e-4, rtol=1e-4), "case 2 mismatch"

    # Case 3: bf16 inputs; K tiling with the separate f32 VMEM accumulator and the
    # >=2 M-block megacore split (weight auto-cast to bf16 in the wrapper).
    x3 = jax.random.normal(kx3, (4, 64, 384), dtype=jnp.bfloat16)
    w3, b3, g3, be3 = make_params(k3, 384, 256)
    out3 = jax.block_until_ready(linear_block(x3, w3, b3, g3, be3, tile_k=128))
    ref3 = _reference(x3.astype(jnp.float32),
                      w3.astype(jnp.bfloat16).astype(jnp.float32), b3, g3, be3)
    assert out3.shape == (4, 64, 256)
    assert jnp.allclose(out3.astype(jnp.float32), ref3,
                        atol=5e-2, rtol=5e-2), "case 3 mismatch"

    print("KERNEL_OK")
</pallas_src>

<mosaic_0001>
module attributes {stable_mosaic.version = 11 : i64} {
  func.func @_linear_block_kernel_resident(%arg0: i32, %arg1: memref<16x32xf32, #tpu.memory_space<vmem>>, %arg2: memref<32x128xf32, #tpu.memory_space<vmem>>, %arg3: memref<3x128xf32, #tpu.memory_space<vmem>>, %arg4: memref<16x128xf32, #tpu.memory_space<vmem>>) attributes {dimension_semantics = [#tpu.dimension_semantics<parallel>], iteration_bounds = array<i64: 1>, scalar_prefetch = 0 : i64, scratch_operands = 0 : i64, tpu.core_type = #tpu.core_type<tc>, window_params = [{transform_indices = @transform_0, window_bounds = array<i64: 16, 32>}, {pipeline_mode = #tpu.pipeline_mode<synchronous>, transform_indices = @transform_1, window_bounds = array<i64: 32, 128>}, {pipeline_mode = #tpu.pipeline_mode<synchronous>, transform_indices = @transform_2, window_bounds = array<i64: 3, 128>}, {transform_indices = @transform_3, window_bounds = array<i64: 16, 128>}]} {
    %c0 = arith.constant 0 : index
    %c0_0 = arith.constant 0 : index
    %0 = vector.load %arg1[%c0, %c0_0] : memref<16x32xf32, #tpu.memory_space<vmem>>, vector<16x32xf32>
    %c0_1 = arith.constant 0 : index
    %c0_2 = arith.constant 0 : index
    %1 = vector.load %arg2[%c0_1, %c0_2] : memref<32x128xf32, #tpu.memory_space<vmem>>, vector<32x128xf32>
    %cst = arith.constant dense<0.000000e+00> : vector<16x128xf32>
    %2 = tpu.matmul %0, %1, %cst {dimension_numbers = #tpu.dot_dimension_numbers<[1], [0], [0], [1], [0, 0, 1, 1], [], []>} : vector<16x32xf32>, vector<32x128xf32>, vector<16x128xf32> -> vector<16x128xf32>
    %c0_3 = arith.constant 0 : index
    %c0_4 = arith.constant 0 : index
    %3 = vector.load %arg3[%c0_3, %c0_4] : memref<3x128xf32, #tpu.memory_space<vmem>>, vector<1x128xf32>
    %4 = vector.broadcast %3 : vector<1x128xf32> to vector<16x128xf32>
    %5 = arith.addf %2, %4 : vector<16x128xf32>
    %c1 = arith.constant 1 : index
    %c0_5 = arith.constant 0 : index
    %6 = vector.load %arg3[%c1, %c0_5] : memref<3x128xf32, #tpu.memory_space<vmem>>, vector<1x128xf32>
    %c2 = arith.constant 2 : index
    %c0_6 = arith.constant 0 : index
    %7 = vector.load %arg3[%c2, %c0_6] : memref<3x128xf32, #tpu.memory_space<vmem>>, vector<1x128xf32>
    %cst_7 = arith.constant dense<0.000000e+00> : vector<16xf32>
    %8 = vector.multi_reduction <add>, %5, %cst_7 [1] : vector<16x128xf32> to vector<16xf32>
    %9 = vector.shape_cast %8 : vector<16xf32> to vector<16x1xf32>
    %cst_8 = arith.constant 3.125000e-02 : f32
    %10 = vector.broadcast %cst_8 : f32 to vector<16x1xf32>
    %11 = arith.mulf %9, %10 : vector<16x1xf32>
    %12 = vector.broadcast %11 : vector<16x1xf32> to vector<16x128xf32>
    %13 = arith.subf %5, %12 : vector<16x128xf32>
    %14 = tpu.iota {dimensions = array<i32: 1>} : vector<1x128xi32>
    %c32_i32 = arith.constant 32 : i32
    %15 = vector.broadcast %c32_i32 : i32 to vector<1x128xi32>
    %16 = arith.cmpi slt, %14, %15 : vector<1x128xi32>
    %cst_9 = arith.constant 0.000000e+00 : f32
    %17 = vector.shape_cast %16 : vector<1x128xi1> to vector<1x128xi1>
    %18 = vector.broadcast %17 : vector<1x128xi1> to vector<16x128xi1>
    %19 = vector.broadcast %cst_9 : f32 to vector<16x128xf32>
    %20 = arith.select %18, %13, %19 : vector<16x128xi1>, vector<16x128xf32>
    %21 = arith.mulf %20, %20 : vector<16x128xf32>
    %cst_10 = arith.constant dense<0.000000e+00> : vector<16xf32>
    %22 = vector.multi_reduction <add>, %21, %cst_10 [1] : vector<16x128xf32> to vector<16xf32>
    %23 = vector.shape_cast %22 : vector<16xf32> to vector<16x1xf32>
    %cst_11 = arith.constant 3.125000e-02 : f32
    %24 = vector.broadcast %cst_11 : f32 to vector<16x1xf32>
    %25 = arith.mulf %23, %24 : vector<16x1xf32>
    %cst_12 = arith.constant 9.99999974E-6 : f32
    %26 = vector.broadcast %cst_12 : f32 to vector<16x1xf32>
    %27 = arith.addf %25, %26 : vector<16x1xf32>
    %28 = math.rsqrt %27 : vector<16x1xf32>
    %29 = vector.broadcast %28 : vector<16x1xf32> to vector<16x128xf32>
    %30 = arith.mulf %20, %29 : vector<16x128xf32>
    %31 = vector.broadcast %6 : vector<1x128xf32> to vector<16x128xf32>
    %32 = arith.mulf %30, %31 : vector<16x128xf32>
    %33 = vector.broadcast %7 : vector<1x128xf32> to vector<16x128xf32>
    %34 = arith.addf %32, %33 : vector<16x128xf32>
    %cst_13 = arith.constant 0.000000e+00 : f32
    %35 = vector.broadcast %cst_13 : f32 to vector<16x128xf32>
    %36 = arith.cmpf oge, %34, %35 : vector<16x128xf32>
    %cst_14 = arith.constant 0.00999999977 : f32
    %37 = vector.broadcast %cst_14 : f32 to vector<16x128xf32>
    %38 = arith.mulf %37, %34 : vector<16x128xf32>
    %39 = arith.select %36, %34, %38 : vector<16x128xi1>, vector<16x128xf32>
    %c0_15 = arith.constant 0 : index
    %c0_16 = arith.constant 0 : index
    %40 = vector.load %arg4[%c0_15, %c0_16] : memref<16x128xf32, #tpu.memory_space<vmem>>, vector<16x128xf32>
    tpu.vector_store %arg4[%c0_15, %c0_16], %39 {strides = array<i32>} : memref<16x128xf32, #tpu.memory_space<vmem>>, vector<16x128xf32>,
    return
  }
  func.func @transform_0(%arg0: i32) -> (i32, i32) {
    %c0_i32 = arith.constant 0 : i32
    %c0_i32_0 = arith.constant 0 : i32
    return %arg0, %c0_i32 : i32, i32
  }
  func.func @transform_1(%arg0: i32) -> (i32, i32) {
    %c0_i32 = arith.constant 0 : i32
    %c0_i32_0 = arith.constant 0 : i32
    %c0_i32_1 = arith.constant 0 : i32
    return %c0_i32, %c0_i32_0 : i32, i32
  }
  func.func @transform_2(%arg0: i32) -> (i32, i32) {
    %c0_i32 = arith.constant 0 : i32
    %c0_i32_0 = arith.constant 0 : i32
    %c0_i32_1 = arith.constant 0 : i32
    return %c0_i32, %c0_i32_0 : i32, i32
  }
  func.func @transform_3(%arg0: i32) -> (i32, i32) {
    %c0_i32 = arith.constant 0 : i32
    %c0_i32_0 = arith.constant 0 : i32
    return %arg0, %c0_i32 : i32, i32
  }
}

module attributes {stable_mosaic.version = 11 : i64} {
  func.func @_linear_block_kernel_resident(%arg0: i32, %arg1: memref<16x32xf32, #tpu.memory_space<vmem>>, %arg2: memref<32x128xf32, #tpu.memory_space<vmem>>, %arg3: memref<3x128xf32, #tpu.memory_space<vmem>>, %arg4: memref<16x128xf32, #tpu.memory_space<vmem>>) attributes {dimension_semantics = [#tpu.dimension_semantics<parallel>], iteration_bounds = array<i64: 1>, scalar_prefetch = 0 : i64, scratch_operands = 0 : i64, tpu.core_type = #tpu.core_type<tc>, window_params = [{transform_indices = @transform_0, window_bounds = array<i64: 16, 32>}, {pipeline_mode = #tpu.pipeline_mode<synchronous>, transform_indices = @transform_1, window_bounds = array<i64: 32, 128>}, {pipeline_mode = #tpu.pipeline_mode<synchronous>, transform_indices = @transform_2, window_bounds = array<i64: 3, 128>}, {transform_indices = @transform_3, window_bounds = array<i64: 16, 128>}]} {
    %c0 = arith.constant 0 : index
    %c0_0 = arith.constant 0 : index
    %0 = vector.load %arg1[%c0, %c0_0] : memref<16x32xf32, #tpu.memory_space<vmem>>, vector<16x32xf32>
    %c0_1 = arith.constant 0 : index
    %c0_2 = arith.constant 0 : index
    %1 = vector.load %arg2[%c0_1, %c0_2] : memref<32x128xf32, #tpu.memory_space<vmem>>, vector<32x128xf32>
    %cst = arith.constant dense<0.000000e+00> : vector<16x128xf32>
    %2 = tpu.matmul %0, %1, %cst {dimension_numbers = #tpu.dot_dimension_numbers<[1], [0], [0], [1], [0, 0, 1, 1], [], []>} : vector<16x32xf32>, vector<32x128xf32>, vector<16x128xf32> -> vector<16x128xf32>
    %c0_3 = arith.constant 0 : index
    %c0_4 = arith.constant 0 : index
    %3 = vector.load %arg3[%c0_3, %c0_4] : memref<3x128xf32, #tpu.memory_space<vmem>>, vector<1x128xf32>
    %4 = vector.broadcast %3 : vector<1x128xf32> to vector<16x128xf32>
    %5 = arith.addf %2, %4 : vector<16x128xf32>
    %c1 = arith.constant 1 : index
    %c0_5 = arith.constant 0 : index
    %6 = vector.load %arg3[%c1, %c0_5] : memref<3x128xf32, #tpu.memory_space<vmem>>, vector<1x128xf32>
    %c2 = arith.constant 2 : index
    %c0_6 = arith.constant 0 : index
    %7 = vector.load %arg3[%c2, %c0_6] : memref<3x128xf32, #tpu.memory_space<vmem>>, vector<1x128xf32>
    %cst_7 = arith.constant dense<0.000000e+00> : vector<16xf32>
    %8 = vector.multi_reduction <add>, %5, %cst_7 [1] : vector<16x128xf32> to vector<16xf32>
    %9 = vector.shape_cast %8 : vector<16xf32> to vector<16x1xf32>
    %cst_8 = arith.constant 3.125000e-02 : f32
    %10 = vector.broadcast %cst_8 : f32 to vector<16x1xf32>
    %11 = arith.mulf %9, %10 : vector<16x1xf32>
    %12 = vector.broadcast %11 : vector<16x1xf32> to vector<16x128xf32>
    %13 = arith.subf %5, %12 : vector<16x128xf32>
    %14 = tpu.iota {dimensions = array<i32: 1>} : vector<1x128xi32>
    %c32_i32 = arith.constant 32 : i32
    %15 = vector.broadcast %c32_i32 : i32 to vector<1x128xi32>
    %16 = arith.cmpi slt, %14, %15 : vector<1x128xi32>
    %cst_9 = arith.constant 0.000000e+00 : f32
    %17 = vector.shape_cast %16 : vector<1x128xi1> to vector<1x128xi1>
    %18 = vector.broadcast %17 : vector<1x128xi1> to vector<16x128xi1>
    %19 = vector.broadcast %cst_9 : f32 to vector<16x128xf32>
    %20 = arith.select %18, %13, %19 : vector<16x128xi1>, vector<16x128xf32>
    %21 = arith.mulf %20, %20 : vector<16x128xf32>
    %cst_10 = arith.constant dense<0.000000e+00> : vector<16xf32>
    %22 = vector.multi_reduction <add>, %21, %cst_10 [1] : vector<16x128xf32> to vector<16xf32>
    %23 = vector.shape_cast %22 : vector<16xf32> to vector<16x1xf32>
    %cst_11 = arith.constant 3.125000e-02 : f32
    %24 = vector.broadcast %cst_11 : f32 to vector<16x1xf32>
    %25 = arith.mulf %23, %24 : vector<16x1xf32>
    %cst_12 = arith.constant 9.99999974E-6 : f32
    %26 = vector.broadcast %cst_12 : f32 to vector<16x1xf32>
    %27 = arith.addf %25, %26 : vector<16x1xf32>
    %28 = math.rsqrt %27 : vector<16x1xf32>
    %29 = vector.broadcast %28 : vector<16x1xf32> to vector<16x128xf32>
    %30 = arith.mulf %20, %29 : vector<16x128xf32>
    %31 = vector.broadcast %6 : vector<1x128xf32> to vector<16x128xf32>
    %32 = arith.mulf %30, %31 : vector<16x128xf32>
    %33 = vector.broadcast %7 : vector<1x128xf32> to vector<16x128xf32>
    %34 = arith.addf %32, %33 : vector<16x128xf32>
    %cst_13 = arith.constant 0.000000e+00 : f32
    %35 = vector.broadcast %cst_13 : f32 to vector<16x128xf32>
    %36 = arith.cmpf oge, %34, %35 : vector<16x128xf32>
    %cst_14 = arith.constant 0.00999999977 : f32
    %37 = vector.broadcast %cst_14 : f32 to vector<16x128xf32>
    %38 = arith.mulf %37, %34 : vector<16x128xf32>
    %39 = arith.select %36, %34, %38 : vector<16x128xi1>, vector<16x128xf32>
    %c0_15 = arith.constant 0 : index
    %c0_16 = arith.constant 0 : index
    %40 = vector.load %arg4[%c0_15, %c0_16] : memref<16x128xf32, #tpu.memory_space<vmem>>, vector<16x128xf32>
    tpu.vector_store %arg4[%c0_15, %c0_16], %39 {strides = array<i32>} : memref<16x128xf32, #tpu.memory_space<vmem>>, vector<16x128xf32>,
    return
  }
  func.func @transform_0(%arg0: i32) -> (i32, i32) {
    %c0_i32 = arith.constant 0 : i32
    %c0_i32_0 = arith.constant 0 : i32
    return %arg0, %c0_i32 : i32, i32
  }
  func.func @transform_1(%arg0: i32) -> (i32, i32) {
    %c0_i32 = arith.constant 0 : i32
    %c0_i32_0 = arith.constant 0 : i32
    %c0_i32_1 = arith.constant 0 : i32
    return %c0_i32, %c0_i32_0 : i32, i32
  }
  func.func @transform_2(%arg0: i32) -> (i32, i32) {
    %c0_i32 = arith.constant 0 : i32
    %c0_i32_0 = arith.constant 0 : i32
    %c0_i32_1 = arith.constant 0 : i32
    return %c0_i32, %c0_i32_0 : i32, i32
  }
  func.func @transform_3(%arg0: i32) -> (i32, i32) {
    %c0_i32 = arith.constant 0 : i32
    %c0_i32_0 = arith.constant 0 : i32
    return %arg0, %c0_i32 : i32, i32
  }
}

</mosaic_0001>

<bundles_post_ra>
// kernel: _linear_block_impl.1
= control target key start
LH: loop header
LB: loop body
LE: loop exit
PB: predicated region body
PF: predicated region fallthrough
CT: control target
= control target key end

     0   :  { %vm22_vm0 = vcmask 261120   ;;  %v62_v11 = vlaneseq  ;;  %s185_s1 = inlined_call_operand.vmem [shape: f32[32,128], index: 1, kind: input, shape index: {}]   ;;  %s186_s2 = inlined_call_operand.vmem [shape: f32[3,128], index: 2, kind: input, shape index: {}]   ;;  %s187_s0 = inlined_call_operand.vmem [shape: f32[16,32], index: 0, kind: input, shape index: {}]   ;;  %s188_s3 = inlined_call_operand.vmem [shape: f32[16,128], index: 3, kind: output, shape index: {}]  }
   0x1   :  { %v19_v0 = vld [vmem:[%s185_s1 + $0x18] sm:$0xff]  ;;  %v18_v1 = vld [vmem:[%s185_s1 + $0x10] sm:$0xff]  ;;  %v17_v2 = vld [vmem:[%s185_s1 + $0x8] sm:$0xff] }
   0x2   :  { %41 = vmatpush.msra.mxu0 %v19_v0  ;;  %121 = vmatpush.msra.mxu1 %v19_v0  ;;  %v16_v3 = vld [vmem:[%s185_s1] sm:$0xff]  ;;  %v15_v5 = vld [vmem:[%s187_s0 + $0x8] sm:$0xff]  ;;  %v63_v12 = vand.u32 127, %v62_v11 }
   0x3   :  { %v14_v4 = vld [vmem:[%s187_s0] sm:$0xff] }
   0x4   :  { %42 = vmatpush.msra.mxu0 %v18_v1  ;;  %122 = vmatpush.msra.mxu1 %v18_v1  ;;  %v125_v6 = vld [vmem:[%s186_s2] ss:$0 sm:$0xff]  ;;  %vm64_vm1 = vcmp.lt.s32.totalorder %v63_v12, 32  ;;  %v126_v37 = vld [vmem:[%s186_s2 + $0x1] ss:$0 sm:$0xff] }
   0x5   :  { %v127_v40 = vld [vmem:[%s186_s2 + $0x2] ss:$0 sm:$0xff] }
   0x6   :  { %43 = vmatpush.msra.mxu0 %v17_v2  ;;  %123 = vmatpush.msra.mxu1 %v17_v2 }
   0x8   :  { %44 = vmatpush.msra.mxu0 %v16_v3  ;;  %124 = vmatpush.msra.mxu1 %v16_v3 }
   0x9   :  { %119 = vmatmul.msk.f32.vlgmr.msra.gmra.mxu0 %vm22_vm0, %v14_v4  ;;  %120 = vmatmul.msk.f32.vlgmr.msra.gmra.mxu1 %vm22_vm0, %v15_v5 }
  0x86   :  { %v46_v7 = vpop.f32.mrf.mxu0  ;;  %v49_v9 = vpop.f32.mrf.mxu1 }
  0x87   :  { %v47_v8 = vadd.f32 %v125_v6, %v46_v7  ;;  %v50_v10 = vadd.f32 %v125_v6, %v49_v9 }
  0x89   :  { %54 = vadd.xlane.f32.xlu0 %v47_v8 }
  0x91   :  { %56 = vadd.xlane.f32.xlu0 %v50_v10 }
  0xfc   :  { %v55_v13 = vpop.xlane.xlu0 %54 }
  0xfd   :  { %v58_v14 = vmul.f32 0.03125, %v55_v13 }
  0xff   :  { %v60_v15 = vsub.f32 %v47_v8, %v58_v14 }
 0x101   :  { %v67_v16 = vsel %vm64_vm1, %v60_v15, 0.0 }
 0x102   :  { %v69_v17 = vmul.f32 %v67_v16, %v67_v16 }
 0x104   :  { %71 = vadd.xlane.f32.xlu1 %v69_v17  ;;  %v57_v18 = vpop.xlane.xlu0 %56 }
 0x105   :  { %v59_v19 = vmul.f32 0.03125, %v57_v18 }
 0x107   :  { %v61_v20 = vsub.f32 %v50_v10, %v59_v19 }
 0x109   :  { %v68_v21 = vsel %vm64_vm1, %v61_v20, 0.0 }
 0x10a   :  { %v70_v22 = vmul.f32 %v68_v21, %v68_v21 }
 0x10c   :  { %73 = vadd.xlane.f32.xlu1 %v70_v22 }
 0x177   :  { %v72_v23 = vpop.xlane.xlu1 %71 }
 0x178   :  { %v75_v24 = vmul.f32 0.03125, %v72_v23 }
 0x17a   :  { %v77_v25 = vadd.f32 1e-05, %v75_v24 }
 0x17c   :  { %128 = vrsqrt.f32 %v77_v25  ;;  %vm85_vm3 = vweird.f32 %v77_v25 }
 0x17f   :  { %v74_v26 = vpop.xlane.xlu1 %73 }
 0x180   :  { %v76_v27 = vmul.f32 0.03125, %v74_v26 }
 0x182   :  { %v129_v28 = vpop.eup %128  ;;  %v78_v29 = vadd.f32 1e-05, %v76_v27 }
 0x183   :  { %v80_v30 = vmul.f32 %v129_v28, %v77_v25  ;;  %vm86_vm2 = vweird.f32 %v129_v28 }
 0x184   :  { %130 = vrsqrt.f32 %v78_v29  ;;  %vm87_vm4 = vmor %vm85_vm3, %vm86_vm2  ;;  %vm95_vm6 = vweird.f32 %v78_v29 }
 0x185   :  { %v81_v31 = vmul.f32 %v129_v28, %v80_v30 }
 0x187   :  { %v82_v32 = vmul.f32 0.5, %v81_v31 }
 0x189   :  { %v83_v33 = vsub.f32 1.5, %v82_v32 }
 0x18a   :  { %v131_v34 = vpop.eup %130 }
 0x18b   :  { %v84_v35 = vmul.f32 %v129_v28, %v83_v33  ;;  %v90_v36 = vmul.f32 %v131_v34, %v78_v29  ;;  %vm96_vm5 = vweird.f32 %v131_v34 }
 0x18c   :  { %vm97_vm8 = vmor %vm95_vm6, %vm96_vm5 }
 0x18d   :  { %v88_v38 = vsel %vm87_vm4, %v129_v28, %v84_v35  ;;  %v91_v39 = vmul.f32 %v131_v34, %v90_v36 }
 0x18e   :  { %v99_v41 = vmul.f32 %v88_v38, %v67_v16 }
 0x18f   :  { %v92_v42 = vmul.f32 0.5, %v91_v39 }
 0x190   :  { %v102_v43 = vmul.f32 %v126_v37, %v99_v41 }
 0x191   :  { %v93_v44 = vsub.f32 1.5, %v92_v42 }
 0x192   :  { %v105_v45 = vadd.f32 %v127_v40, %v102_v43 }
 0x193   :  { %v94_v46 = vmul.f32 %v131_v34, %v93_v44 }
 0x194   :  { %vm107_vm7 = vcmp.ge.f32.partialorder %v105_v45, 0.0  ;;  %v109_v47 = vmul.f32 0.01, %v105_v45 }
 0x195   :  { %v98_v48 = vsel %vm97_vm8, %v131_v34, %v94_v46 }
 0x196   :  { %v111_v49 = vsel %vm107_vm7, %v105_v45, %v109_v47  ;;  %v100_v50 = vmul.f32 %v98_v48, %v68_v21 }
 0x197   :  { %113 = vst [vmem:[%s188_s3] sm:$0xff] %v111_v49 }
 0x198   :  { %v103_v51 = vmul.f32 %v126_v37, %v100_v50 }
 0x19a   :  { %v106_v52 = vadd.f32 %v127_v40, %v103_v51 }
 0x19c   :  { %vm108_vm9 = vcmp.ge.f32.partialorder %v106_v52, 0.0  ;;  %v110_v53 = vmul.f32 0.01, %v106_v52 }
 0x19e   :  { %v112_v54 = vsel %vm108_vm9, %v106_v52, %v110_v53 }
 0x19f   :  { %114 = vst [vmem:[%s188_s3 + $0x8] sm:$0xff] %v112_v54 }

// kernel: _linear_block_impl.1
= control target key start
LH: loop header
LB: loop body
LE: loop exit
PB: predicated region body
PF: predicated region fallthrough
CT: control target
= control target key end

     0   :  { %vm22_vm0 = vcmask 261120   ;;  %v62_v11 = vlaneseq  ;;  %s185_s1 = inlined_call_operand.vmem [shape: f32[32,128], index: 1, kind: input, shape index: {}]   ;;  %s186_s2 = inlined_call_operand.vmem [shape: f32[3,128], index: 2, kind: input, shape index: {}]   ;;  %s187_s0 = inlined_call_operand.vmem [shape: f32[16,32], index: 0, kind: input, shape index: {}]   ;;  %s188_s3 = inlined_call_operand.vmem [shape: f32[16,128], index: 3, kind: output, shape index: {}]  }
   0x1   :  { %v19_v0 = vld [vmem:[%s185_s1 + $0x18] sm:$0xff]  ;;  %v18_v1 = vld [vmem:[%s185_s1 + $0x10] sm:$0xff]  ;;  %v17_v2 = vld [vmem:[%s185_s1 + $0x8] sm:$0xff] }
   0x2   :  { %41 = vmatpush.msra.mxu0 %v19_v0  ;;  %121 = vmatpush.msra.mxu1 %v19_v0  ;;  %v16_v3 = vld [vmem:[%s185_s1] sm:$0xff]  ;;  %v15_v5 = vld [vmem:[%s187_s0 + $0x8] sm:$0xff]  ;;  %v63_v12 = vand.u32 127, %v62_v11 }
   0x3   :  { %v14_v4 = vld [vmem:[%s187_s0] sm:$0xff] }
   0x4   :  { %42 = vmatpush.msra.mxu0 %v18_v1  ;;  %122 = vmatpush.msra.mxu1 %v18_v1  ;;  %v125_v6 = vld [vmem:[%s186_s2] ss:$0 sm:$0xff]  ;;  %vm64_vm1 = vcmp.lt.s32.totalorder %v63_v12, 32  ;;  %v126_v37 = vld [vmem:[%s186_s2 + $0x1] ss:$0 sm:$0xff] }
   0x5   :  { %v127_v40 = vld [vmem:[%s186_s2 + $0x2] ss:$0 sm:$0xff] }
   0x6   :  { %43 = vmatpush.msra.mxu0 %v17_v2  ;;  %123 = vmatpush.msra.mxu1 %v17_v2 }
   0x8   :  { %44 = vmatpush.msra.mxu0 %v16_v3  ;;  %124 = vmatpush.msra.mxu1 %v16_v3 }
   0x9   :  { %119 = vmatmul.msk.f32.vlgmr.msra.gmra.mxu0 %vm22_vm0, %v14_v4  ;;  %120 = vmatmul.msk.f32.vlgmr.msra.gmra.mxu1 %vm22_vm0, %v15_v5 }
  0x86   :  { %v46_v7 = vpop.f32.mrf.mxu0  ;;  %v49_v9 = vpop.f32.mrf.mxu1 }
  0x87   :  { %v47_v8 = vadd.f32 %v125_v6, %v46_v7  ;;  %v50_v10 = vadd.f32 %v125_v6, %v49_v9 }
  0x89   :  { %54 = vadd.xlane.f32.xlu0 %v47_v8 }
  0x91   :  { %56 = vadd.xlane.f32.xlu0 %v50_v10 }
  0xfc   :  { %v55_v13 = vpop.xlane.xlu0 %54 }
  0xfd   :  { %v58_v14 = vmul.f32 0.03125, %v55_v13 }
  0xff   :  { %v60_v15 = vsub.f32 %v47_v8, %v58_v14 }
 0x101   :  { %v67_v16 = vsel %vm64_vm1, %v60_v15, 0.0 }
 0x102   :  { %v69_v17 = vmul.f32 %v67_v16, %v67_v16 }
 0x104   :  { %71 = vadd.xlane.f32.xlu1 %v69_v17  ;;  %v57_v18 = vpop.xlane.xlu0 %56 }
 0x105   :  { %v59_v19 = vmul.f32 0.03125, %v57_v18 }
 0x107   :  { %v61_v20 = vsub.f32 %v50_v10, %v59_v19 }
 0x109   :  { %v68_v21 = vsel %vm64_vm1, %v61_v20, 0.0 }
 0x10a   :  { %v70_v22 = vmul.f32 %v68_v21, %v68_v21 }
 0x10c   :  { %73 = vadd.xlane.f32.xlu1 %v70_v22 }
 0x177   :  { %v72_v23 = vpop.xlane.xlu1 %71 }
 0x178   :  { %v75_v24 = vmul.f32 0.03125, %v72_v23 }
 0x17a   :  { %v77_v25 = vadd.f32 1e-05, %v75_v24 }
 0x17c   :  { %128 = vrsqrt.f32 %v77_v25  ;;  %vm85_vm3 = vweird.f32 %v77_v25 }
 0x17f   :  { %v74_v26 = vpop.xlane.xlu1 %73 }
 0x180   :  { %v76_v27 = vmul.f32 0.03125, %v74_v26 }
 0x182   :  { %v129_v28 = vpop.eup %128  ;;  %v78_v29 = vadd.f32 1e-05, %v76_v27 }
 0x183   :  { %v80_v30 = vmul.f32 %v129_v28, %v77_v25  ;;  %vm86_vm2 = vweird.f32 %v129_v28 }
 0x184   :  { %130 = vrsqrt.f32 %v78_v29  ;;  %vm87_vm4 = vmor %vm85_vm3, %vm86_vm2  ;;  %vm95_vm6 = vweird.f32 %v78_v29 }
 0x185   :  { %v81_v31 = vmul.f32 %v129_v28, %v80_v30 }
 0x187   :  { %v82_v32 = vmul.f32 0.5, %v81_v31 }
 0x189   :  { %v83_v33 = vsub.f32 1.5, %v82_v32 }
 0x18a   :  { %v131_v34 = vpop.eup %130 }
 0x18b   :  { %v84_v35 = vmul.f32 %v129_v28, %v83_v33  ;;  %v90_v36 = vmul.f32 %v131_v34, %v78_v29  ;;  %vm96_vm5 = vweird.f32 %v131_v34 }
 0x18c   :  { %vm97_vm8 = vmor %vm95_vm6, %vm96_vm5 }
 0x18d   :  { %v88_v38 = vsel %vm87_vm4, %v129_v28, %v84_v35  ;;  %v91_v39 = vmul.f32 %v131_v34, %v90_v36 }
 0x18e   :  { %v99_v41 = vmul.f32 %v88_v38, %v67_v16 }
 0x18f   :  { %v92_v42 = vmul.f32 0.5, %v91_v39 }
 0x190   :  { %v102_v43 = vmul.f32 %v126_v37, %v99_v41 }
 0x191   :  { %v93_v44 = vsub.f32 1.5, %v92_v42 }
 0x192   :  { %v105_v45 = vadd.f32 %v127_v40, %v102_v43 }
 0x193   :  { %v94_v46 = vmul.f32 %v131_v34, %v93_v44 }
 0x194   :  { %vm107_vm7 = vcmp.ge.f32.partialorder %v105_v45, 0.0  ;;  %v109_v47 = vmul.f32 0.01, %v105_v45 }
 0x195   :  { %v98_v48 = vsel %vm97_vm8, %v131_v34, %v94_v46 }
 0x196   :  { %v111_v49 = vsel %vm107_vm7, %v105_v45, %v109_v47  ;;  %v100_v50 = vmul.f32 %v98_v48, %v68_v21 }
 0x197   :  { %113 = vst [vmem:[%s188_s3] sm:$0xff] %v111_v49 }
 0x198   :  { %v103_v51 = vmul.f32 %v126_v37, %v100_v50 }
 0x19a   :  { %v106_v52 = vadd.f32 %v127_v40, %v103_v51 }
 0x19c   :  { %vm108_vm9 = vcmp.ge.f32.partialorder %v106_v52, 0.0  ;;  %v110_v53 = vmul.f32 0.01, %v106_v52 }
 0x19e   :  { %v112_v54 = vsel %vm108_vm9, %v106_v52, %v110_v53 }
 0x19f   :  { %114 = vst [vmem:[%s188_s3 + $0x8] sm:$0xff] %v112_v54 }

</bundles_post_ra>
